<compile_context>
chip_gen: v6e
topology: v6e:2x2x1
jax: 0.10.0
libtpu: 0.0.40
codegen_flags: <defaults>
</compile_context>

<pallas_src>
import math

import jax
import jax.numpy as jnp
from jax.experimental import pallas as pl
from jax.experimental.pallas import tpu as pltpu


def _round_up(x, m):
    return ((x + m - 1) // m) * m


def _default_vmem_limit():
    try:
        cap = pltpu.get_tpu_info().vmem_capacity_bytes
    except Exception:
        cap = 64 * 1024 * 1024  # conservative (v7x-sized) if query unavailable
    # Leave ~25% headroom for compiler-internal scratch.
    return min(100 * 1024 * 1024, (cap * 3) // 4)


# ----------------------------------------------------------------------------
# One-time (init-time) parameter preparation.
# ----------------------------------------------------------------------------
def prepare_lm_head_params(params, *, tv=2048, compute_dtype=jnp.bfloat16):
    """Cast weights to the MXU streaming dtype, pre-transpose so the kernel
    runs plain [M,K]x[K,N] dots, and pad the vocab dim to a multiple of the
    vocab tile.  Call ONCE at model init, not per forward."""
    H = params["dense_w"].shape[0]
    V = params["emb_w"].shape[0]
    Vp0 = _round_up(V, 128)
    tv_eff = min(tv, Vp0)
    Vp = _round_up(Vp0, tv_eff)

    emb_wT = jnp.asarray(params["emb_w"], compute_dtype).T          # [H, V]
    dec_b = params["dec_b"].astype(jnp.float32)
    if Vp != V:
        emb_wT = jnp.pad(emb_wT, ((0, 0), (0, Vp - V)))
        dec_b = jnp.pad(dec_b, (0, Vp - V))

    return {
        "H": H, "V": V, "Vp": Vp, "tv": tv_eff,
        "compute_dtype": jnp.dtype(compute_dtype),
        "dense_wT": jnp.asarray(params["dense_w"], compute_dtype).T,  # [H_in, H_out]
        "dense_b": params["dense_b"].astype(jnp.float32).reshape(1, H),
        "ln_w": params["ln_w"].astype(jnp.float32).reshape(1, H),
        "ln_b": params["ln_b"].astype(jnp.float32).reshape(1, H),
        "emb_wT": emb_wT,                                            # [H, Vp]
        "dec_b": dec_b.reshape(1, Vp),
        "seq_rel_w": params["seq_rel_w"],
        "seq_rel_b": params["seq_rel_b"],
    }


# ----------------------------------------------------------------------------
# LM prediction head kernel
#   grid = (Mp // tm, Vp // tv); vocab axis (j) is the inner, "arbitrary" axis.
#   The transform output h is computed only at j == 0, cast once to the MXU
#   streaming dtype, and cached in VMEM scratch across the vocab axis.
# ----------------------------------------------------------------------------
def lm_head_kernel(x_ref, wdT_ref, bd_ref, lnw_ref, lnb_ref, weT_ref, be_ref,
                   out_ref, h_ref):
    @pl.when(pl.program_id(1) == 0)
    def _():
        # dense: x @ Wd^T (+ bd); Wd pre-transposed to [H_in, H_out] at init.
        x = x_ref[...].astype(wdT_ref.dtype)
        h = jnp.dot(x, wdT_ref[...], preferred_element_type=jnp.float32)
        h = h + bd_ref[...].astype(jnp.float32)

        # exact-erf gelu: x * 0.5 * (1 + erf(x / sqrt(2)))
        h = h * 0.5 * (1.0 + jax.lax.erf(h * (1.0 / math.sqrt(2.0))))

        # LayerNorm over hidden, eps=1e-12, elementwise affine (f32 math).
        mean = jnp.mean(h, axis=-1, keepdims=True)
        cent = h - mean
        var = jnp.mean(cent * cent, axis=-1, keepdims=True)
        h = cent * jax.lax.rsqrt(var + 1e-12)
        h = h * lnw_ref[...].astype(jnp.float32) + lnb_ref[...].astype(jnp.float32)

        # Single cast to the MXU streaming dtype; no per-j recast needed.
        h_ref[...] = h.astype(h_ref.dtype)

    # decoder: h @ We_tile (+ be_tile); We pre-transposed to [H, Vp] at init,
    # so this is a standard [M,K]x[K,N] dot (no per-tile XLU transpose).
    logits = jnp.dot(h_ref[...], weT_ref[...], preferred_element_type=jnp.float32)
    out_ref[...] = (logits + be_ref[...].astype(jnp.float32)).astype(out_ref.dtype)


# ----------------------------------------------------------------------------
# Wrapper
# ----------------------------------------------------------------------------
def bert_pretraining_heads(sequence_output, pooled_output, params,
                           calculate_seq_score=True, *,
                           tm=512, tv=2048,
                           compute_dtype=jnp.bfloat16, out_dtype=jnp.float32,
                           decoder_buffers=2, vmem_limit_bytes=None):
    """sequence_output: [B, S, H], pooled_output: [B, H].

    `params` may be either raw parameters or the output of
    prepare_lm_head_params (preferred: prepare once at init).
    Defaults (tm=512, tv=2048, bf16 weights) target real BERT shapes and fit
    v7x's 64 MiB VMEM (~23 MiB used); on v6e consider decoder_buffers=3 if
    the weight DMA is still exposed.
    """
    if "emb_wT" not in params:
        # TODO(synk): in real use call prepare_lm_head_params once at init,
        # not per forward (this path re-pads/transposes the big weight).
        params = prepare_lm_head_params(params, tv=tv, compute_dtype=compute_dtype)
    prepared = params

    B, S, H = sequence_output.shape
    M = B * S
    V, Vp, tv_eff = prepared["V"], prepared["Vp"], prepared["tv"]
    cdt = prepared["compute_dtype"]

    x = sequence_output.reshape(M, H)

    # Dtype-aware sublane rounding (f32: 8, bf16: 16, int8: 32) and a cap so
    # the "parallel" M axis has >= 2 steps when possible (feeds both v7x TCs).
    min_itemsize = min(jnp.dtype(sequence_output.dtype).itemsize,
                       jnp.dtype(cdt).itemsize,
                       jnp.dtype(out_dtype).itemsize)
    sub = max(8, 32 // min_itemsize)
    tm_cap = _round_up(pl.cdiv(M, 2), sub) if M > sub else _round_up(M, sub)
    tm_eff = max(sub, min(tm, tm_cap))
    Mp = _round_up(M, tm_eff)
    if Mp != M:
        x = jnp.pad(x, ((0, Mp - M), (0, 0)))

    grid = (Mp // tm_eff, Vp // tv_eff)

    if vmem_limit_bytes is None:
        vmem_limit_bytes = _default_vmem_limit()

    def make_call(use_pipeline_mode):
        def inv_spec(shape):
            # Grid-invariant operands: single-buffer to give VMEM back.
            if use_pipeline_mode:
                return pl.BlockSpec(shape, lambda i, j: (0, 0),
                                    pipeline_mode=pl.Buffered(1))
            return pl.BlockSpec(shape, lambda i, j: (0, 0))

        if use_pipeline_mode and decoder_buffers != 2:
            dec_w_spec = pl.BlockSpec((H, tv_eff), lambda i, j: (0, j),
                                      pipeline_mode=pl.Buffered(decoder_buffers))
        else:
            dec_w_spec = pl.BlockSpec((H, tv_eff), lambda i, j: (0, j))

        return pl.pallas_call(
            lm_head_kernel,
            out_shape=jax.ShapeDtypeStruct((Mp, Vp), out_dtype),
            grid_spec=pltpu.PrefetchScalarGridSpec(
                num_scalar_prefetch=0,
                grid=grid,
                in_specs=[
                    pl.BlockSpec((tm_eff, H), lambda i, j: (i, 0)),   # x rows
                    inv_spec((H, H)),                                 # dense_wT
                    inv_spec((1, H)),                                 # dense bias
                    inv_spec((1, H)),                                 # LN weight
                    inv_spec((1, H)),                                 # LN bias
                    dec_w_spec,                                       # emb_wT tile [H, tv]
                    pl.BlockSpec((1, tv_eff), lambda i, j: (0, j)),   # decoder bias tile
                ],
                out_specs=pl.BlockSpec((tm_eff, tv_eff), lambda i, j: (i, j)),
                scratch_shapes=[pltpu.VMEM((tm_eff, H), cdt)],        # cached h (bf16)
            ),
            compiler_params=pltpu.CompilerParams(
                dimension_semantics=("parallel", "arbitrary"),
                vmem_limit_bytes=vmem_limit_bytes),
        )

    args = (x, prepared["dense_wT"], prepared["dense_b"], prepared["ln_w"],
            prepared["ln_b"], prepared["emb_wT"], prepared["dec_b"])
    try:
        logits = make_call(True)(*args)
    except Exception:
        # pipeline_mode=pl.Buffered is a pure VMEM optimization; fall back to
        # default double-buffering if this JAX/Mosaic build rejects it.
        logits = make_call(False)(*args)

    if Mp != M or Vp != V:
        # TODO(synk): for training, keep the padded vocab columns and mask in
        # the loss to avoid this extra read+write pass over the logits.
        logits = logits[:M, :V]
    prediction_scores = logits.reshape(B, S, V)

    if not calculate_seq_score:
        return prediction_scores, None

    # H -> 2 matmul is launch-overhead dominated in a kernel (2 of 256 MXU
    # lanes, masked partial stores); keep it in plain JAX.
    seq_relationship_score = (
        pooled_output.astype(jnp.float32) @ prepared["seq_rel_w"].T.astype(jnp.float32)
        + prepared["seq_rel_b"].astype(jnp.float32)
    ).astype(out_dtype)

    return prediction_scores, seq_relationship_score


# ----------------------------------------------------------------------------
# Pure-JAX reference for correctness checking
# ----------------------------------------------------------------------------
def reference(sequence_output, pooled_output, params):
    x = sequence_output.astype(jnp.float32)
    h = x @ params["dense_w"].T + params["dense_b"]
    h = h * 0.5 * (1.0 + jax.lax.erf(h / jnp.sqrt(2.0)))
    mean = jnp.mean(h, axis=-1, keepdims=True)
    var = jnp.mean((h - mean) ** 2, axis=-1, keepdims=True)
    h = (h - mean) / jnp.sqrt(var + 1e-12)
    h = h * params["ln_w"] + params["ln_b"]
    pred = h @ params["emb_w"].T + params["dec_b"]
    seq = (pooled_output.astype(jnp.float32) @ params["seq_rel_w"].T
           + params["seq_rel_b"])
    return pred, seq


def _make_params(key, H, V):
    ks = jax.random.split(key, 6)
    return {
        "dense_w": 0.05 * jax.random.normal(ks[0], (H, H), dtype=jnp.float32),
        "dense_b": 0.01 * jax.random.normal(ks[1], (H,), dtype=jnp.float32),
        "ln_w": jnp.ones((H,), dtype=jnp.float32),
        "ln_b": jnp.zeros((H,), dtype=jnp.float32),
        # tied embedding weights [V, H]
        "emb_w": 0.05 * jax.random.normal(ks[2], (V, H), dtype=jnp.float32),
        # decoder bias initialized to zeros (as in the module)
        "dec_b": jnp.zeros((V,), dtype=jnp.float32),
        "seq_rel_w": 0.05 * jax.random.normal(ks[3], (2, H), dtype=jnp.float32),
        "seq_rel_b": 0.01 * jax.random.normal(ks[4], (2,), dtype=jnp.float32),
    }


def _run_case(key, B, S, H, V, compute_dtype, atol):
    k1, k2, k3 = jax.random.split(key, 3)
    sequence_output = jax.random.normal(k1, (B, S, H), dtype=jnp.float32)
    pooled_output = jax.random.normal(k2, (B, H), dtype=jnp.float32)
    params = _make_params(k3, H, V)

    # One-time (init-style) preparation, then the forward call.
    prepared = prepare_lm_head_params(params, compute_dtype=compute_dtype)
    pred, seq_rel = bert_pretraining_heads(sequence_output, pooled_output, prepared)
    pred = jax.block_until_ready(pred)
    seq_rel = jax.block_until_ready(seq_rel)

    pred_ref, seq_ref = reference(sequence_output, pooled_output, params)
    assert pred.shape == (B, S, V) and seq_rel.shape == (B, 2)
    assert jnp.allclose(pred, pred_ref, atol=atol, rtol=atol), \
        float(jnp.max(jnp.abs(pred - pred_ref)))
    assert jnp.allclose(seq_rel, seq_ref, atol=atol, rtol=atol)


if __name__ == "__main__":
    key = jax.random.PRNGKey(0)
    k_a, k_b, k_c = jax.random.split(key, 3)

    # f32 parity case: B=2, S=8, H=32, V=128 (tight tolerance vs reference)
    _run_case(k_a, B=2, S=8, H=32, V=128, compute_dtype=jnp.float32, atol=1e-4)

    # Ragged case exercising M/V padding: B=2, S=5 (M=10), V=200
    _run_case(k_b, B=2, S=5, H=32, V=200, compute_dtype=jnp.float32, atol=1e-4)

    # Production path: bf16 weight streaming / bf16 cached h, f32 accumulation
    _run_case(k_c, B=2, S=8, H=32, V=128, compute_dtype=jnp.bfloat16, atol=5e-2)

    print("KERNEL_OK")
</pallas_src>

<mosaic_0001>
module attributes {stable_mosaic.version = 11 : i64} {
  func.func @lm_head_kernel(%arg0: i32, %arg1: i32, %arg2: memref<8x32xf32, #tpu.memory_space<vmem>>, %arg3: memref<32x32xf32, #tpu.memory_space<vmem>>, %arg4: memref<1x32xf32, #tpu.memory_space<vmem>>, %arg5: memref<1x32xf32, #tpu.memory_space<vmem>>, %arg6: memref<1x32xf32, #tpu.memory_space<vmem>>, %arg7: memref<32x128xf32, #tpu.memory_space<vmem>>, %arg8: memref<1x128xf32, #tpu.memory_space<vmem>>, %arg9: memref<8x128xf32, #tpu.memory_space<vmem>>, %arg10: memref<8x32xf32, #tpu.memory_space<vmem>>) attributes {dimension_semantics = [#tpu.dimension_semantics<parallel>, #tpu.dimension_semantics<arbitrary>], iteration_bounds = array<i64: 2, 1>, scalar_prefetch = 0 : i64, scratch_operands = 1 : i64, tpu.core_type = #tpu.core_type<tc>, window_params = [{transform_indices = @transform_0, window_bounds = array<i64: 8, 32>}, {pipeline_mode = #tpu.pipeline_mode<synchronous>, transform_indices = @transform_1, window_bounds = array<i64: 32, 32>}, {pipeline_mode = #tpu.pipeline_mode<synchronous>, transform_indices = @transform_2, window_bounds = array<i64: 1, 32>}, {pipeline_mode = #tpu.pipeline_mode<synchronous>, transform_indices = @transform_3, window_bounds = array<i64: 1, 32>}, {pipeline_mode = #tpu.pipeline_mode<synchronous>, transform_indices = @transform_4, window_bounds = array<i64: 1, 32>}, {transform_indices = @transform_5, window_bounds = array<i64: 32, 128>}, {transform_indices = @transform_6, window_bounds = array<i64: 1, 128>}, {transform_indices = @transform_7, window_bounds = array<i64: 8, 128>}]} {
    %c0_i32 = arith.constant 0 : i32
    %0 = arith.cmpi eq, %arg1, %c0_i32 : i32
    %1 = arith.extui %0 : i1 to i32
    %c0_i32_0 = arith.constant 0 : i32
    %2 = arith.cmpi ne, %1, %c0_i32_0 : i32
    scf.if %2 {
      %c0_8 = arith.constant 0 : index
      %c0_9 = arith.constant 0 : index
      %10 = vector.load %arg2[%c0_8, %c0_9] : memref<8x32xf32, #tpu.memory_space<vmem>>, vector<8x32xf32>
      %c0_10 = arith.constant 0 : index
      %c0_11 = arith.constant 0 : index
      %11 = vector.load %arg3[%c0_10, %c0_11] : memref<32x32xf32, #tpu.memory_space<vmem>>, vector<32x32xf32>
      %cst_12 = arith.constant dense<0.000000e+00> : vector<8x32xf32>
      %12 = tpu.matmul %10, %11, %cst_12 {dimension_numbers = #tpu.dot_dimension_numbers<[1], [0], [0], [1], [0, 0, 1, 1], [], []>} : vector<8x32xf32>, vector<32x32xf32>, vector<8x32xf32> -> vector<8x32xf32>
      %c0_13 = arith.constant 0 : index
      %c0_14 = arith.constant 0 : index
      %13 = vector.load %arg4[%c0_13, %c0_14] : memref<1x32xf32, #tpu.memory_space<vmem>>, vector<1x32xf32>
      %14 = vector.broadcast %13 : vector<1x32xf32> to vector<8x32xf32>
      %15 = arith.addf %12, %14 : vector<8x32xf32>
      %cst_15 = arith.constant 5.000000e-01 : f32
      %16 = vector.broadcast %cst_15 : f32 to vector<8x32xf32>
      %17 = arith.mulf %15, %16 : vector<8x32xf32>
      %cst_16 = arith.constant 0.707106769 : f32
      %18 = vector.broadcast %cst_16 : f32 to vector<8x32xf32>
      %19 = arith.mulf %15, %18 : vector<8x32xf32>
      %20 = math.erf %19 : vector<8x32xf32>
      %cst_17 = arith.constant 1.000000e+00 : f32
      %21 = vector.broadcast %cst_17 : f32 to vector<8x32xf32>
      %22 = arith.addf %21, %20 : vector<8x32xf32>
      %23 = arith.mulf %17, %22 : vector<8x32xf32>
      %cst_18 = arith.constant dense<0.000000e+00> : vector<8xf32>
      %24 = vector.multi_reduction <add>, %23, %cst_18 [1] : vector<8x32xf32> to vector<8xf32>
      %25 = vector.shape_cast %24 : vector<8xf32> to vector<8x1xf32>
      %cst_19 = arith.constant 3.200000e+01 : f32
      %26 = vector.broadcast %cst_19 : f32 to vector<8x1xf32>
      %27 = arith.divf %25, %26 : vector<8x1xf32>
      %28 = vector.broadcast %27 : vector<8x1xf32> to vector<8x32xf32>
      %29 = arith.subf %23, %28 : vector<8x32xf32>
      %30 = arith.mulf %29, %29 : vector<8x32xf32>
      %cst_20 = arith.constant dense<0.000000e+00> : vector<8xf32>
      %31 = vector.multi_reduction <add>, %30, %cst_20 [1] : vector<8x32xf32> to vector<8xf32>
      %32 = vector.shape_cast %31 : vector<8xf32> to vector<8x1xf32>
      %cst_21 = arith.constant 3.200000e+01 : f32
      %33 = vector.broadcast %cst_21 : f32 to vector<8x1xf32>
      %34 = arith.divf %32, %33 : vector<8x1xf32>
      %cst_22 = arith.constant 9.99999996E-13 : f32
      %35 = vector.broadcast %cst_22 : f32 to vector<8x1xf32>
      %36 = arith.addf %34, %35 : vector<8x1xf32>
      %37 = math.rsqrt %36 : vector<8x1xf32>
      %38 = vector.broadcast %37 : vector<8x1xf32> to vector<8x32xf32>
      %39 = arith.mulf %29, %38 : vector<8x32xf32>
      %c0_23 = arith.constant 0 : index
      %c0_24 = arith.constant 0 : index
      %40 = vector.load %arg5[%c0_23, %c0_24] : memref<1x32xf32, #tpu.memory_space<vmem>>, vector<1x32xf32>
      %41 = vector.broadcast %40 : vector<1x32xf32> to vector<8x32xf32>
      %42 = arith.mulf %39, %41 : vector<8x32xf32>
      %c0_25 = arith.constant 0 : index
      %c0_26 = arith.constant 0 : index
      %43 = vector.load %arg6[%c0_25, %c0_26] : memref<1x32xf32, #tpu.memory_space<vmem>>, vector<1x32xf32>
      %44 = vector.broadcast %43 : vector<1x32xf32> to vector<8x32xf32>
      %45 = arith.addf %42, %44 : vector<8x32xf32>
      %c0_27 = arith.constant 0 : index
      %c0_28 = arith.constant 0 : index
      %46 = vector.load %arg10[%c0_27, %c0_28] : memref<8x32xf32, #tpu.memory_space<vmem>>, vector<8x32xf32>
      tpu.vector_store %arg10[%c0_27, %c0_28], %45 {strides = array<i32>} : memref<8x32xf32, #tpu.memory_space<vmem>>, vector<8x32xf32>,
    } else {
    }
    %c0 = arith.constant 0 : index
    %c0_1 = arith.constant 0 : index
    %3 = vector.load %arg10[%c0, %c0_1] : memref<8x32xf32, #tpu.memory_space<vmem>>, vector<8x32xf32>
    %c0_2 = arith.constant 0 : index
    %c0_3 = arith.constant 0 : index
    %4 = vector.load %arg7[%c0_2, %c0_3] : memref<32x128xf32, #tpu.memory_space<vmem>>, vector<32x128xf32>
    %cst = arith.constant dense<0.000000e+00> : vector<8x128xf32>
    %5 = tpu.matmul %3, %4, %cst {dimension_numbers = #tpu.dot_dimension_numbers<[1], [0], [0], [1], [0, 0, 1, 1], [], []>} : vector<8x32xf32>, vector<32x128xf32>, vector<8x128xf32> -> vector<8x128xf32>
    %c0_4 = arith.constant 0 : index
    %c0_5 = arith.constant 0 : index
    %6 = vector.load %arg8[%c0_4, %c0_5] : memref<1x128xf32, #tpu.memory_space<vmem>>, vector<1x128xf32>
    %7 = vector.broadcast %6 : vector<1x128xf32> to vector<8x128xf32>
    %8 = arith.addf %5, %7 : vector<8x128xf32>
    %c0_6 = arith.constant 0 : index
    %c0_7 = arith.constant 0 : index
    %9 = vector.load %arg9[%c0_6, %c0_7] : memref<8x128xf32, #tpu.memory_space<vmem>>, vector<8x128xf32>
    tpu.vector_store %arg9[%c0_6, %c0_7], %8 {strides = array<i32>} : memref<8x128xf32, #tpu.memory_space<vmem>>, vector<8x128xf32>,
    return
  }
  func.func @transform_0(%arg0: i32, %arg1: i32) -> (i32, i32) {
    %c0_i32 = arith.constant 0 : i32
    %c0_i32_0 = arith.constant 0 : i32
    return %arg0, %c0_i32 : i32, i32
  }
  func.func @transform_1(%arg0: i32, %arg1: i32) -> (i32, i32) {
    %c0_i32 = arith.constant 0 : i32
    %c0_i32_0 = arith.constant 0 : i32
    %c0_i32_1 = arith.constant 0 : i32
    return %c0_i32, %c0_i32_0 : i32, i32
  }
  func.func @transform_2(%arg0: i32, %arg1: i32) -> (i32, i32) {
    %c0_i32 = arith.constant 0 : i32
    %c0_i32_0 = arith.constant 0 : i32
    %c0_i32_1 = arith.constant 0 : i32
    return %c0_i32, %c0_i32_0 : i32, i32
  }
  func.func @transform_3(%arg0: i32, %arg1: i32) -> (i32, i32) {
    %c0_i32 = arith.constant 0 : i32
    %c0_i32_0 = arith.constant 0 : i32
    %c0_i32_1 = arith.constant 0 : i32
    return %c0_i32, %c0_i32_0 : i32, i32
  }
  func.func @transform_4(%arg0: i32, %arg1: i32) -> (i32, i32) {
    %c0_i32 = arith.constant 0 : i32
    %c0_i32_0 = arith.constant 0 : i32
    %c0_i32_1 = arith.constant 0 : i32
    return %c0_i32, %c0_i32_0 : i32, i32
  }
  func.func @transform_5(%arg0: i32, %arg1: i32) -> (i32, i32) {
    %c0_i32 = arith.constant 0 : i32
    %c0_i32_0 = arith.constant 0 : i32
    return %c0_i32, %arg1 : i32, i32
  }
  func.func @transform_6(%arg0: i32, %arg1: i32) -> (i32, i32) {
    %c0_i32 = arith.constant 0 : i32
    %c0_i32_0 = arith.constant 0 : i32
    return %c0_i32, %arg1 : i32, i32
  }
  func.func @transform_7(%arg0: i32, %arg1: i32) -> (i32, i32) {
    %c0_i32 = arith.constant 0 : i32
    return %arg0, %arg1 : i32, i32
  }
}

module attributes {stable_mosaic.version = 11 : i64} {
  func.func @lm_head_kernel(%arg0: i32, %arg1: i32, %arg2: memref<8x32xf32, #tpu.memory_space<vmem>>, %arg3: memref<32x32xf32, #tpu.memory_space<vmem>>, %arg4: memref<1x32xf32, #tpu.memory_space<vmem>>, %arg5: memref<1x32xf32, #tpu.memory_space<vmem>>, %arg6: memref<1x32xf32, #tpu.memory_space<vmem>>, %arg7: memref<32x128xf32, #tpu.memory_space<vmem>>, %arg8: memref<1x128xf32, #tpu.memory_space<vmem>>, %arg9: memref<8x128xf32, #tpu.memory_space<vmem>>, %arg10: memref<8x32xf32, #tpu.memory_space<vmem>>) attributes {dimension_semantics = [#tpu.dimension_semantics<parallel>, #tpu.dimension_semantics<arbitrary>], iteration_bounds = array<i64: 2, 1>, scalar_prefetch = 0 : i64, scratch_operands = 1 : i64, tpu.core_type = #tpu.core_type<tc>, window_params = [{transform_indices = @transform_0, window_bounds = array<i64: 8, 32>}, {pipeline_mode = #tpu.pipeline_mode<synchronous>, transform_indices = @transform_1, window_bounds = array<i64: 32, 32>}, {pipeline_mode = #tpu.pipeline_mode<synchronous>, transform_indices = @transform_2, window_bounds = array<i64: 1, 32>}, {pipeline_mode = #tpu.pipeline_mode<synchronous>, transform_indices = @transform_3, window_bounds = array<i64: 1, 32>}, {pipeline_mode = #tpu.pipeline_mode<synchronous>, transform_indices = @transform_4, window_bounds = array<i64: 1, 32>}, {transform_indices = @transform_5, window_bounds = array<i64: 32, 128>}, {transform_indices = @transform_6, window_bounds = array<i64: 1, 128>}, {transform_indices = @transform_7, window_bounds = array<i64: 8, 128>}]} {
    %c0_i32 = arith.constant 0 : i32
    %0 = arith.cmpi eq, %arg1, %c0_i32 : i32
    %1 = arith.extui %0 : i1 to i32
    %c0_i32_0 = arith.constant 0 : i32
    %2 = arith.cmpi ne, %1, %c0_i32_0 : i32
    scf.if %2 {
      %c0_8 = arith.constant 0 : index
      %c0_9 = arith.constant 0 : index
      %10 = vector.load %arg2[%c0_8, %c0_9] : memref<8x32xf32, #tpu.memory_space<vmem>>, vector<8x32xf32>
      %c0_10 = arith.constant 0 : index
      %c0_11 = arith.constant 0 : index
      %11 = vector.load %arg3[%c0_10, %c0_11] : memref<32x32xf32, #tpu.memory_space<vmem>>, vector<32x32xf32>
      %cst_12 = arith.constant dense<0.000000e+00> : vector<8x32xf32>
      %12 = tpu.matmul %10, %11, %cst_12 {dimension_numbers = #tpu.dot_dimension_numbers<[1], [0], [0], [1], [0, 0, 1, 1], [], []>} : vector<8x32xf32>, vector<32x32xf32>, vector<8x32xf32> -> vector<8x32xf32>
      %c0_13 = arith.constant 0 : index
      %c0_14 = arith.constant 0 : index
      %13 = vector.load %arg4[%c0_13, %c0_14] : memref<1x32xf32, #tpu.memory_space<vmem>>, vector<1x32xf32>
      %14 = vector.broadcast %13 : vector<1x32xf32> to vector<8x32xf32>
      %15 = arith.addf %12, %14 : vector<8x32xf32>
      %cst_15 = arith.constant 5.000000e-01 : f32
      %16 = vector.broadcast %cst_15 : f32 to vector<8x32xf32>
      %17 = arith.mulf %15, %16 : vector<8x32xf32>
      %cst_16 = arith.constant 0.707106769 : f32
      %18 = vector.broadcast %cst_16 : f32 to vector<8x32xf32>
      %19 = arith.mulf %15, %18 : vector<8x32xf32>
      %20 = math.erf %19 : vector<8x32xf32>
      %cst_17 = arith.constant 1.000000e+00 : f32
      %21 = vector.broadcast %cst_17 : f32 to vector<8x32xf32>
      %22 = arith.addf %21, %20 : vector<8x32xf32>
      %23 = arith.mulf %17, %22 : vector<8x32xf32>
      %cst_18 = arith.constant dense<0.000000e+00> : vector<8xf32>
      %24 = vector.multi_reduction <add>, %23, %cst_18 [1] : vector<8x32xf32> to vector<8xf32>
      %25 = vector.shape_cast %24 : vector<8xf32> to vector<8x1xf32>
      %cst_19 = arith.constant 3.200000e+01 : f32
      %26 = vector.broadcast %cst_19 : f32 to vector<8x1xf32>
      %27 = arith.divf %25, %26 : vector<8x1xf32>
      %28 = vector.broadcast %27 : vector<8x1xf32> to vector<8x32xf32>
      %29 = arith.subf %23, %28 : vector<8x32xf32>
      %30 = arith.mulf %29, %29 : vector<8x32xf32>
      %cst_20 = arith.constant dense<0.000000e+00> : vector<8xf32>
      %31 = vector.multi_reduction <add>, %30, %cst_20 [1] : vector<8x32xf32> to vector<8xf32>
      %32 = vector.shape_cast %31 : vector<8xf32> to vector<8x1xf32>
      %cst_21 = arith.constant 3.200000e+01 : f32
      %33 = vector.broadcast %cst_21 : f32 to vector<8x1xf32>
      %34 = arith.divf %32, %33 : vector<8x1xf32>
      %cst_22 = arith.constant 9.99999996E-13 : f32
      %35 = vector.broadcast %cst_22 : f32 to vector<8x1xf32>
      %36 = arith.addf %34, %35 : vector<8x1xf32>
      %37 = math.rsqrt %36 : vector<8x1xf32>
      %38 = vector.broadcast %37 : vector<8x1xf32> to vector<8x32xf32>
      %39 = arith.mulf %29, %38 : vector<8x32xf32>
      %c0_23 = arith.constant 0 : index
      %c0_24 = arith.constant 0 : index
      %40 = vector.load %arg5[%c0_23, %c0_24] : memref<1x32xf32, #tpu.memory_space<vmem>>, vector<1x32xf32>
      %41 = vector.broadcast %40 : vector<1x32xf32> to vector<8x32xf32>
      %42 = arith.mulf %39, %41 : vector<8x32xf32>
      %c0_25 = arith.constant 0 : index
      %c0_26 = arith.constant 0 : index
      %43 = vector.load %arg6[%c0_25, %c0_26] : memref<1x32xf32, #tpu.memory_space<vmem>>, vector<1x32xf32>
      %44 = vector.broadcast %43 : vector<1x32xf32> to vector<8x32xf32>
      %45 = arith.addf %42, %44 : vector<8x32xf32>
      %c0_27 = arith.constant 0 : index
      %c0_28 = arith.constant 0 : index
      %46 = vector.load %arg10[%c0_27, %c0_28] : memref<8x32xf32, #tpu.memory_space<vmem>>, vector<8x32xf32>
      tpu.vector_store %arg10[%c0_27, %c0_28], %45 {strides = array<i32>} : memref<8x32xf32, #tpu.memory_space<vmem>>, vector<8x32xf32>,
    } else {
    }
    %c0 = arith.constant 0 : index
    %c0_1 = arith.constant 0 : index
    %3 = vector.load %arg10[%c0, %c0_1] : memref<8x32xf32, #tpu.memory_space<vmem>>, vector<8x32xf32>
    %c0_2 = arith.constant 0 : index
    %c0_3 = arith.constant 0 : index
    %4 = vector.load %arg7[%c0_2, %c0_3] : memref<32x128xf32, #tpu.memory_space<vmem>>, vector<32x128xf32>
    %cst = arith.constant dense<0.000000e+00> : vector<8x128xf32>
    %5 = tpu.matmul %3, %4, %cst {dimension_numbers = #tpu.dot_dimension_numbers<[1], [0], [0], [1], [0, 0, 1, 1], [], []>} : vector<8x32xf32>, vector<32x128xf32>, vector<8x128xf32> -> vector<8x128xf32>
    %c0_4 = arith.constant 0 : index
    %c0_5 = arith.constant 0 : index
    %6 = vector.load %arg8[%c0_4, %c0_5] : memref<1x128xf32, #tpu.memory_space<vmem>>, vector<1x128xf32>
    %7 = vector.broadcast %6 : vector<1x128xf32> to vector<8x128xf32>
    %8 = arith.addf %5, %7 : vector<8x128xf32>
    %c0_6 = arith.constant 0 : index
    %c0_7 = arith.constant 0 : index
    %9 = vector.load %arg9[%c0_6, %c0_7] : memref<8x128xf32, #tpu.memory_space<vmem>>, vector<8x128xf32>
    tpu.vector_store %arg9[%c0_6, %c0_7], %8 {strides = array<i32>} : memref<8x128xf32, #tpu.memory_space<vmem>>, vector<8x128xf32>,
    return
  }
  func.func @transform_0(%arg0: i32, %arg1: i32) -> (i32, i32) {
    %c0_i32 = arith.constant 0 : i32
    %c0_i32_0 = arith.constant 0 : i32
    return %arg0, %c0_i32 : i32, i32
  }
  func.func @transform_1(%arg0: i32, %arg1: i32) -> (i32, i32) {
    %c0_i32 = arith.constant 0 : i32
    %c0_i32_0 = arith.constant 0 : i32
    %c0_i32_1 = arith.constant 0 : i32
    return %c0_i32, %c0_i32_0 : i32, i32
  }
  func.func @transform_2(%arg0: i32, %arg1: i32) -> (i32, i32) {
    %c0_i32 = arith.constant 0 : i32
    %c0_i32_0 = arith.constant 0 : i32
    %c0_i32_1 = arith.constant 0 : i32
    return %c0_i32, %c0_i32_0 : i32, i32
  }
  func.func @transform_3(%arg0: i32, %arg1: i32) -> (i32, i32) {
    %c0_i32 = arith.constant 0 : i32
    %c0_i32_0 = arith.constant 0 : i32
    %c0_i32_1 = arith.constant 0 : i32
    return %c0_i32, %c0_i32_0 : i32, i32
  }
  func.func @transform_4(%arg0: i32, %arg1: i32) -> (i32, i32) {
    %c0_i32 = arith.constant 0 : i32
    %c0_i32_0 = arith.constant 0 : i32
    %c0_i32_1 = arith.constant 0 : i32
    return %c0_i32, %c0_i32_0 : i32, i32
  }
  func.func @transform_5(%arg0: i32, %arg1: i32) -> (i32, i32) {
    %c0_i32 = arith.constant 0 : i32
    %c0_i32_0 = arith.constant 0 : i32
    return %c0_i32, %arg1 : i32, i32
  }
  func.func @transform_6(%arg0: i32, %arg1: i32) -> (i32, i32) {
    %c0_i32 = arith.constant 0 : i32
    %c0_i32_0 = arith.constant 0 : i32
    return %c0_i32, %arg1 : i32, i32
  }
  func.func @transform_7(%arg0: i32, %arg1: i32) -> (i32, i32) {
    %c0_i32 = arith.constant 0 : i32
    return %arg0, %arg1 : i32, i32
  }
}

</mosaic_0001>

<bundles_post_ra>
// kernel: tpu_custom_call.1
= control target key start
LH: loop header
LB: loop body
LE: loop exit
PB: predicated region body
PF: predicated region fallthrough
CT: control target
= control target key end

     0   :  { %s1260_s0 = inlined_call_operand.hbm [shape: f32[16,32], index: 0, kind: input, shape index: {}]   ;;  %s1261_s1 = inlined_call_operand.hbm [shape: f32[32,32], index: 1, kind: input, shape index: {}]   ;;  %s1262_s2 = inlined_call_operand.vmem [shape: f32[1,32], index: 2, kind: input, shape index: {}]   ;;  %s1263_s3 = inlined_call_operand.vmem [shape: f32[1,32], index: 3, kind: input, shape index: {}]   ;;  %s1264_s4 = inlined_call_operand.vmem [shape: f32[1,32], index: 4, kind: input, shape index: {}]   ;;  %s1265_s5 = inlined_call_operand.hbm [shape: f32[32,128], index: 5, kind: input, shape index: {}]   ;;  %s1266_s6 = inlined_call_operand.vmem [shape: f32[1,128], index: 6, kind: input, shape index: {}]   ;;  %s1267_s7 = inlined_call_operand.hbm [shape: f32[16,128], index: 7, kind: output, shape index: {}]  }
   0x1   :  { %1272 = sst [smem:[#allocation14_spill]] %s1261_s1 }
   0x2   :  { %1273 = sst [smem:[#allocation15_spill]] %s1265_s5 }
   0x3   :  { %12 = vsyncpa [#allocation4], 0 }
   0x4   :  { %14 = vsyncpa [#allocation4 + $0x1], 0 }
   0x5   :  { %15 = vsyncpa [#allocation7], 0 }
   0x6   :  { %16 = vsyncpa [#allocation5], 0 }
   0x7   :  { %18 = vsyncpa [#allocation5 + $0x1], 0  ;;  %s1059_s24 = smov 0   ;;  %s1061_s25 = smov 0  }
   0x8   :  { %s1063_s26 = smov 0   ;;  %s1065_s27 = smov 0  }
   0x9   :  { %s1067_s28 = smov 0   ;;  %s1069_s29 = smov 0  }
   0xa LB: > { %s698_s30 = sadd.s32 4294967295, %s1009_s29   ;;  %s699_s8 = sadd.s32 4294967294, %s1009_s29   ;;  %s1009_s29 = sphi %s1069_s29, %s24_s29   ;;  %s1005_s28 = sphi %s1067_s28, %s1294_s28   ;;  %s1001_s27 = sphi %s1065_s27, %s1293_s27   ;;  %s997_s26 = sphi %s1063_s26, %s1292_s26   ;;  %s993_s25 = sphi %s1061_s25, %s1291_s25   ;;  %s989_s24 = sphi %s1059_s24, %s1290_s24  }
   0xb   : > { %p56_p0 = scmp.ne.s32.totalorder %s993_s25, %s989_s24  ;;  %p1093_p1 = scmp.eq.s32.totalorder %s698_s30, 0 }
   0xc   : > { %p1097_p2 = scmp.eq.s32.totalorder %s698_s30, 1  ;;  %p224_p3 = scmp.eq.s32.totalorder %s699_s8, 1 }
   0xd   : > { %s1274_s9 = scalar_select %p1093_p1, 1, 0 }
   0xe   : > { %p1103_p4 = por %p1093_p1, %p56_p0  ;;  %p700_p5 = scmp.ge.s32.totalorder %s1009_s29, 1 }
   0xf   : > { %p1108_p6 = por %p224_p3, %p56_p0  ;;  %p231_p7 = scmp.lt.s32.totalorder %s1009_s29, 3 }
  0x10   : > { %s1276_s11 = scalar_select %p1103_p4, 1, 0 }
  0x11   : > { %s1277_s12 = scalar_select %p1108_p6, 1, 0 }
  0x12   : > { %p1113_p8 = pnand %p700_p5, %p231_p7  ;;  %s1011_s14 = smov [#allocation6]  }
  0x13   : > { %s243_s15 = sshll.u32 %s1011_s14, 4  ;;  %s1012_s17 = smov [#allocation8]   ;;  %s244_s15 = int_to_ptr.vmem [resolvable:$true] %s243_s15 }
  0x14   : > { %p766_p9 = pneg %p1113_p8  ;;  %s267_s18 = sshll.u32 %s1012_s17, 4  ;;  %s268_s18 = int_to_ptr.vmem [resolvable:$true] %s267_s18 }
  0x15   : > { %s856_s19 = scalar_lea.vmem %s244_s15, 512  ;;  %p864_p5 = scmp.lt.s32.totalorder %s244_s15, %s244_s15 }
  0x16   : > { %p1122_p11 = pnand %p766_p9, %p1093_p1  ;;  %p857_p13 = scmp.ne.s32.totalorder %s244_s15, %s856_s19 }
  0x17   : > { %p865_p7 = scmp.lt.s32.totalorder %s856_s19, %s856_s19 }
  0x18   : > { %p847_p12 = pneg %p1122_p11 }
  0x19   : > { %p866_p10 = por %p865_p7, %p864_p5 }
  0x1a   : > { %p859_p0 = pnand %p857_p13, %p847_p12 }
  0x1c   : > { %p860_p3 = pneg %p859_p0 }
  0x1e   : > { %p867_p9 = pnand %p866_p10, %p860_p3 }
  0x20   : > { %870 = shalt.err (!%p867_p9)
}
  0x21   : > { %s1013_s20 = smov 128   ;;  %s1014_s21 = smov 8  }
  0x22   : > { %s1280_s1 = sld [smem:[#allocation14_spill]]  ;;  %s882_s30 = scalar_lea.vmem %s268_s18, 512 }
  0x23   : > { %p883_p6 = scmp.ne.s32.totalorder %s268_s18, %s882_s30  ;;  %p890_p1 = scmp.lt.s32.totalorder %s268_s18, %s268_s18 }
  0x24   : > { %p891_p4 = scmp.lt.s32.totalorder %s882_s30, %s882_s30 }
  0x25   : > { %p885_p13 = pnand %p883_p6, %p847_p12 }
  0x26   : > { %p892_p5 = por %p891_p4, %p890_p1 }
  0x27   : > { %p886_p0 = pneg %p885_p13 }
  0x28   : > { %769 = dma.hbm_to_vmem [thread:$0]  (!%p1122_p11), %s1280_s1, 512, %s244_s15, [#allocation7], %s1013_s20, %s1013_s20, %s1014_s21  }
  0x29   : > { %p893_p10 = pnand %p892_p5, %p886_p0 }
  0x2b   : > { %896 = shalt.err (!%p893_p10)
}
  0x2c   : > { %s1281_s5 = sld [smem:[#allocation15_spill]]  ;;  %s36_s15 = sadd.s32 1, %s1005_s28 }
  0x2d   : > { %s43_s17 = sadd.s32 1, %s997_s26  ;;  %p38_p1 = scmp.ge.s32.totalorder %s36_s15, 2 }
  0x2e   : > { %p50_p4 = scmp.ne.s32.totalorder %s997_s26, %s993_s25  ;;  %p51_p6 = scmp.eq.s32.totalorder %s1009_s29, 0 }
  0x2f   : > { %p783_p12 = scmp.lt.s32.totalorder %s1009_s29, 2  ;;  %s1296_s15 = smov (%p38_p1, %s36_s15), 0 }
  0x30   : > { %1282 = sst [smem:[#allocation13_spill]] %s1296_s15  ;;  %p52_p3 = por %p51_p6, %p50_p4 }
  0x31   : > { %p1154_p7 = por %p1097_p2, %p50_p4  ;;  %s40_s19 = ssub.s32 %s1005_s28, %s1296_s15 }
  0x32   : > { %772 = dma.hbm_to_vmem [thread:$0]  (!%p1122_p11), %s1281_s5, 512, %s268_s18, [#allocation7], %s1013_s20, %s1013_s20, %s1014_s21  }
  0x33   : > { %s287_s22 = sand.u32 1, %s997_s26   ;;  %p41_p9 = scmp.eq.s32.totalorder %s40_s19, 0 }
  0x34   : > { %s705_s18 = sshll.u32 %s287_s22, 3  ;;  %s706_s20 = sshll.u32 %s1005_s28, 7 }
  0x35   : > { %s1163_s21 = scalar_select %p41_p9, %s997_s26, %s43_s17  }
  0x36   : > { %s296_s8 = scalar_lea.hbm %s1260_s0, %s706_s20  ;;  %s291_s14 = scalar_lea.vmem [#allocation3], %s705_s18 }
  0x37   : > { %s298_s1 = sshll.u32 %s291_s14, 4  ;;  %p1170_p11 = pnand %p783_p12, %p52_p3  ;;  %s299_s1 = int_to_ptr.vmem [resolvable:$true] %s298_s1 }
  0x38   : > { %s288_s5 = scalar_lea.sflag [#allocation4], %s287_s22  ;;  %s910_s19 = scalar_lea.vmem %s299_s1, 128 }
  0x39   : > { %p899_p2 = pneg %p1170_p11  ;;  %p911_p13 = scmp.ne.s32.totalorder %s299_s1, %s910_s19 }
  0x3a   : > { %s1015_s17 = smov [#allocation3]  }
  0x3b   : > { %p913_p0 = pnand %p911_p13, %p899_p2  ;;  %s915_s15 = sshll.u32 %s1015_s17, 4  ;;  %s916_s15 = int_to_ptr.vmem [resolvable:$false] %s915_s15 }
  0x3c   : > { %s917_s20 = scalar_lea.vmem %s916_s15, 256  ;;  %p918_p10 = scmp.lt.s32.totalorder %s299_s1, %s916_s15 }
  0x3d   : > { %p914_p5 = pneg %p913_p0  ;;  %p919_p1 = scmp.lt.s32.totalorder %s917_s20, %s910_s19 }
  0x3f   : > { %p920_p4 = por %p919_p1, %p918_p10 }
  0x41   : > { %p921_p6 = pnand %p920_p4, %p914_p5 }
  0x43   : > { %924 = shalt.err (!%p921_p6)
}
  0x44   : > { %776 = dma.hbm_to_vmem [thread:$0]  (!%p1170_p11), %s296_s8, 128, %s299_s1, %s288_s5  }
  0x45   : > { %307 = sbr.rel (%p1113_p8) target bundleno = 827 (0x33b), region = 48  ;;  %s1181_s22 = sand.u32 (!%p1113_p8), 1, %s993_s25  }
  0x46   : > { %s708_s18 = sshll.u32 (!%p1113_p8), %s1181_s22, 3  ;;  %s310_s23 = scalar_lea.sflag (!%p1113_p8), [#allocation4], %s1181_s22 }
  0x47   : > { %s313_s15 = scalar_lea.vmem (!%p1113_p8), [#allocation3], %s708_s18  ;;  %p1285_p12 = scmp.ne.s32.totalorder (!%p1113_p8), %s1276_s11, 0 }
  0x4a   : > { %976 = dma.done.wait (%p1285_p12), %s310_s23, 128  }
  0x4b   : > { %978 = vsyncadd (%p1285_p12), %s310_s23, 4294967168  ;;  %p1286_p3 = scmp.ne.s32.totalorder %s1274_s9, 0 }
  0x4d   : > { %980 = dma.done.wait (%p1286_p3), [#allocation7], 1024  }
  0x4e   : > { %982 = vsyncadd (%p1286_p3), [#allocation7], 4294966272  ;;  %v1016_v0 = vmov 0.0   ;;  %vm1017_vm0 = vmmov 0   ;;  %v366_v1 = vld [vmem:[#allocation6 + $0x18] sm:$0xff]  ;;  %v365_v2 = vld [vmem:[#allocation6 + $0x10] sm:$0xff] }
  0x4f   : > { %732 = vmatprep.subr.mxu0 %v1016_v0  ;;  %740 = vmatprep.mubr.msk.f32.mxu0 %vm1017_vm0, %v1016_v0  ;;  %v364_v3 = vld [vmem:[#allocation6 + $0x8] sm:$0xff]  ;;  %v363_v4 = vld [vmem:[#allocation6] sm:$0xff]  ;;  %v362_v5 = vld [vmem:[%s313_s15] sm:$0xff]  ;;  %vm374_vm1 = vcmask 261120   ;;  %s719_s10 = sshll.u32 %s1001_s27, 7  ;;  %s354_s19 = scalar_lea.vmem [#allocation9], %s708_s18 }
  0x50   : > { %743 = vmatprep.subr.mxu1 %v1016_v0  ;;  %751 = vmatprep.mubr.msk.f32.mxu1 %vm1017_vm0, %v1016_v0  ;;  %v712_v6 = vld [vmem:[%s1262_s2] ss:$0 sm:$0xff]  ;;  %v488_v21 = vld [vmem:[#allocation8 + $0x18] sm:$0xff]  ;;  %v487_v22 = vld [vmem:[#allocation8 + $0x10] sm:$0xff]  ;;  %s586_s17 = sshll.u32 %s354_s19, 4  ;;  %s1218_s15 = scalar_lea.hbm %s1267_s7, %s719_s10  ;;  %s587_s17 = int_to_ptr.vmem [resolvable:$true] %s586_s17 }
  0x51   : > { %733 = vmatpush3.msra.mxu0 %v366_v1  ;;  %744 = vmatpush3.msra.mxu1 %v488_v21  ;;  %v486_v23 = vld [vmem:[#allocation8 + $0x8] sm:$0xff]  ;;  %v485_v24 = vld [vmem:[#allocation8] sm:$0xff]  ;;  %s572_s1 = scalar_lea.sflag [#allocation5], %s1181_s22  ;;  %s925_s5 = scalar_lea.vmem %s587_s17, 128 }
  0x52   : > { %734 = vmatprep.subr.mxu0 %v1016_v0  ;;  %745 = vmatprep.subr.mxu1 %v1016_v0  ;;  %v714_v29 = vld [vmem:[%s1263_s3] ss:$0 sm:$0xff]  ;;  %p926_p8 = scmp.ne.s32.totalorder %s587_s17, %s925_s5  ;;  %s1018_s27 = smov [#allocation9]  }
  0x53   : > { %735 = vmatpush3.msra.mxu0 %v365_v2  ;;  %746 = vmatpush3.msra.mxu1 %v487_v22  ;;  %v715_v31 = vld [vmem:[%s1264_s4] ss:$0 sm:$0xff]  ;;  %s929_s9 = sshll.u32 %s1018_s27, 4  ;;  %s930_s9 = int_to_ptr.vmem [resolvable:$false] %s929_s9 }
  0x54   : > { %736 = vmatprep.subr.mxu0 %v1016_v0  ;;  %747 = vmatprep.subr.mxu1 %v1016_v0  ;;  %v716_v35 = vld [vmem:[%s1266_s6] ss:$0 sm:$0xff]  ;;  %p927_p9 = pnand %p926_p8, %p1154_p7  ;;  %s931_s18 = scalar_lea.vmem %s930_s9, 256 }
  0x55   : > { %737 = vmatpush3.msra.mxu0 %v364_v3  ;;  %748 = vmatpush3.msra.mxu1 %v486_v23  ;;  %p932_p2 = scmp.lt.s32.totalorder %s587_s17, %s930_s9  ;;  %p933_p13 = scmp.lt.s32.totalorder %s931_s18, %s925_s5 }
  0x56   : > { %738 = vmatprep.subr.mxu0 %v1016_v0  ;;  %749 = vmatprep.subr.mxu1 %v1016_v0  ;;  %p928_p11 = pneg %p927_p9 }
  0x57   : > { %739 = vmatpush3.msra.mxu0 %v363_v4  ;;  %750 = vmatpush3.msra.mxu1 %v485_v24  ;;  %p934_p0 = por %p933_p13, %p932_p2 }
  0x58   : > { %741 = vmatmul.mubr.msk.f32.vlgmr.msra.gmra.mxu0 %vm374_vm1, %v362_v5 }
  0x59   : > { %p935_p5 = pnand %p934_p0, %p928_p11 }
 0x118   : > { %v444_v7 = vpop.f32.mrf.mxu0 }
 0x119   : > { %v445_v8 = vadd.f32 %v712_v6, %v444_v7 }
 0x11a   : > { %v742_v9 = vpop.f32.mrf.mxu0 }
 0x11b   : > { %v449_v10 = vmul.f32 0.70710677, %v445_v8  ;;  %v448_v12 = vmul.f32 0.5, %v445_v8 }
 0x11d   : > { %841 = verf.f32 %v449_v10 }
 0x12a   : > { %v842_v11 = vpop.eup %841 }
 0x12b   : > { %v451_v13 = vadd.f32 1.0, %v842_v11 }
 0x12d   : > { %v452_v14 = vmul.f32 %v451_v13, %v448_v12 }
 0x12f   : > { %v453_v15 = vsel %vm374_vm1, %v452_v14, 0.0 }
 0x130   : > { %454 = vadd.xlane.f32.xlu0 %v453_v15 }
 0x1b9   : > { %v455_v16 = vpop.xlane.xlu0 %454 }
 0x1ba   : > { %v457_v17 = vmul.f32 0.03125, %v455_v16 }
 0x1bc   : > { %v458_v18 = vsub.f32 %v452_v14, %v457_v17 }
 0x1be   : > { %v459_v19 = vmul.f32 %v458_v18, %v458_v18 }
 0x1c0   : > { %v460_v20 = vsel %vm374_vm1, %v459_v19, 0.0 }
 0x1c1   : > { %461 = vadd.xlane.f32.xlu0 %v460_v20 }
 0x24a   : > { %v462_v25 = vpop.xlane.xlu0 %461 }
 0x24b   : > { %v463_v26 = vmul.f32 0.03125, %v462_v25 }
 0x24d   : > { %v464_v27 = vadd.f32 1e-12, %v463_v26 }
 0x24f   : > { %843 = vrsqrt.f32 %v464_v27 }
 0x25c   : > { %v844_v28 = vpop.eup %843 }
 0x25d   : > { %v466_v30 = vmul.f32 %v844_v28, %v458_v18 }
 0x25f   : > { %v474_v32 = vmul.f32 %v714_v29, %v466_v30 }
 0x261   : > { %v482_v33 = vadd.f32 %v715_v31, %v474_v32 }
 0x263   : > { %483 = vst.msk [vmem:[#allocation2] sm:$0xff] %vm374_vm1, %v482_v33 }
 0x26a   : > { %v484_v34 = vld [vmem:[#allocation2] sm:$0xff] }
 0x26b   : > { %752 = vmatmul.mubr.msk.f32.vlgmr.msra.gmra.mxu1 %vm374_vm1, %v484_v34 }
 0x32b   : > { %v566_v36 = vpop.f32.mrf.mxu1 }
 0x32c   : > { %v567_v37 = vadd.f32 %v716_v35, %v566_v36 }
 0x32d   : > { %v753_v38 = vpop.f32.mrf.mxu1 }
 0x32e   : > { %570 = vst [vmem:[%s354_s19] sm:$0xff] %v567_v37 }
 0x32f   : > { %938 = shalt.err (!%p935_p5)
}
 0x330   : > { %s939_s11 = scalar_lea.hbm %s1218_s15, 128  ;;  %s943_s30 = scalar_lea.hbm %s1267_s7, 256 }
 0x331   : > { %p940_p10 = scmp.ne.s32.totalorder %s1218_s15, %s939_s11  ;;  %p944_p6 = scmp.lt.s32.totalorder %s1218_s15, %s1267_s7 }
 0x332   : > { %p945_p12 = scmp.lt.s32.totalorder %s943_s30, %s939_s11 }
 0x333   : > { %p941_p1 = pnand %p940_p10, %p1154_p7 }
 0x334   : > { %p946_p3 = por %p945_p12, %p944_p6 }
 0x335   : > { %p942_p4 = pneg %p941_p1 }
 0x337   : > { %p947_p8 = pnand %p946_p3, %p942_p4 }
 0x339   : > { %950 = shalt.err (!%p947_p8)
}
 0x33a   : > { %764 = dma.vmem_to_hbm [thread:$0]  (%p1154_p7), %s587_s17, 128, %s1218_s15, %s572_s1  }
 0x33b PF: > { %s598_s10 = sand.u32 1, %s989_s24   ;;  %p1287_p9 = scmp.ne.s32.totalorder %s1277_s12, 0 }
 0x33c   : > { %p1288_p11 = scmp.ge.s32.totalorder %s1009_s29, 2  ;;  %s599_s19 = scalar_lea.sflag [#allocation5], %s598_s10 }
 0x33e   : > { %p778_p2 = pnand %p1288_p11, %p1287_p9 }
 0x340   : > { %p779_p13 = pneg %p778_p2 }
 0x342   : > { %984 = dma.done.wait (%p779_p13), %s599_s19, 128  }
 0x343   : > { %986 = vsyncadd (%p779_p13), %s599_s19, 4294967168  ;;  %s24_s29 = sadd.s32 1, %s1009_s29   ;;  %s1289_s16 = sld [smem:[#allocation13_spill]] }
 0x344   : > { %p21_p0 = scmp.ge.s32.totalorder %s24_s29, 4   ;;  %s1290_s24 = smov %s993_s25 }
 0x345   : > { %s1291_s25 = smov %s997_s26  ;;  %s1292_s26 = smov %s1163_s21 }
 0x346   : > { %s1293_s27 = smov %s1005_s28  ;;  %23 = sbr.rel (!%p21_p0) target bundleno = 10 (0xa), region = 109 }
 0x349   : > { %s1294_s28 = smov %s1289_s16 }
 0x34b   :  { %604 = vsyncpa [#allocation4], 1 }
 0x34c   :  { %606 = vsyncpa [#allocation4 + $0x1], 1 }
 0x34d   :  { %607 = vsyncpa [#allocation7], 1 }
 0x34e   :  { %608 = vsyncpa [#allocation5], 1 }
 0x34f   :  { %610 = vsyncpa [#allocation5 + $0x1], 1 }

// kernel: tpu_custom_call.1
= control target key start
LH: loop header
LB: loop body
LE: loop exit
PB: predicated region body
PF: predicated region fallthrough
CT: control target
= control target key end

     0   :  { %s1260_s0 = inlined_call_operand.hbm [shape: f32[16,32], index: 0, kind: input, shape index: {}]   ;;  %s1261_s1 = inlined_call_operand.hbm [shape: f32[32,32], index: 1, kind: input, shape index: {}]   ;;  %s1262_s2 = inlined_call_operand.vmem [shape: f32[1,32], index: 2, kind: input, shape index: {}]   ;;  %s1263_s3 = inlined_call_operand.vmem [shape: f32[1,32], index: 3, kind: input, shape index: {}]   ;;  %s1264_s4 = inlined_call_operand.vmem [shape: f32[1,32], index: 4, kind: input, shape index: {}]   ;;  %s1265_s5 = inlined_call_operand.hbm [shape: f32[32,128], index: 5, kind: input, shape index: {}]   ;;  %s1266_s6 = inlined_call_operand.vmem [shape: f32[1,128], index: 6, kind: input, shape index: {}]   ;;  %s1267_s7 = inlined_call_operand.hbm [shape: f32[16,128], index: 7, kind: output, shape index: {}]  }
   0x1   :  { %1272 = sst [smem:[#allocation14_spill]] %s1261_s1 }
   0x2   :  { %1273 = sst [smem:[#allocation15_spill]] %s1265_s5 }
   0x3   :  { %12 = vsyncpa [#allocation4], 0 }
   0x4   :  { %14 = vsyncpa [#allocation4 + $0x1], 0 }
   0x5   :  { %15 = vsyncpa [#allocation7], 0 }
   0x6   :  { %16 = vsyncpa [#allocation5], 0 }
   0x7   :  { %18 = vsyncpa [#allocation5 + $0x1], 0  ;;  %s1059_s24 = smov 0   ;;  %s1061_s25 = smov 0  }
   0x8   :  { %s1063_s26 = smov 0   ;;  %s1065_s27 = smov 0  }
   0x9   :  { %s1067_s28 = smov 0   ;;  %s1069_s29 = smov 0  }
   0xa LB: > { %s698_s30 = sadd.s32 4294967295, %s1009_s29   ;;  %s699_s8 = sadd.s32 4294967294, %s1009_s29   ;;  %s1009_s29 = sphi %s1069_s29, %s24_s29   ;;  %s1005_s28 = sphi %s1067_s28, %s1294_s28   ;;  %s1001_s27 = sphi %s1065_s27, %s1293_s27   ;;  %s997_s26 = sphi %s1063_s26, %s1292_s26   ;;  %s993_s25 = sphi %s1061_s25, %s1291_s25   ;;  %s989_s24 = sphi %s1059_s24, %s1290_s24  }
   0xb   : > { %p56_p0 = scmp.ne.s32.totalorder %s993_s25, %s989_s24  ;;  %p1093_p1 = scmp.eq.s32.totalorder %s698_s30, 0 }
   0xc   : > { %p1097_p2 = scmp.eq.s32.totalorder %s698_s30, 1  ;;  %p224_p3 = scmp.eq.s32.totalorder %s699_s8, 1 }
   0xd   : > { %s1274_s9 = scalar_select %p1093_p1, 1, 0 }
   0xe   : > { %p1103_p4 = por %p1093_p1, %p56_p0  ;;  %p700_p5 = scmp.ge.s32.totalorder %s1009_s29, 1 }
   0xf   : > { %p1108_p6 = por %p224_p3, %p56_p0  ;;  %p231_p7 = scmp.lt.s32.totalorder %s1009_s29, 3 }
  0x10   : > { %s1276_s11 = scalar_select %p1103_p4, 1, 0 }
  0x11   : > { %s1277_s12 = scalar_select %p1108_p6, 1, 0 }
  0x12   : > { %p1113_p8 = pnand %p700_p5, %p231_p7  ;;  %s1011_s14 = smov [#allocation6]  }
  0x13   : > { %s243_s15 = sshll.u32 %s1011_s14, 4  ;;  %s1012_s17 = smov [#allocation8]   ;;  %s244_s15 = int_to_ptr.vmem [resolvable:$true] %s243_s15 }
  0x14   : > { %p766_p9 = pneg %p1113_p8  ;;  %s267_s18 = sshll.u32 %s1012_s17, 4  ;;  %s268_s18 = int_to_ptr.vmem [resolvable:$true] %s267_s18 }
  0x15   : > { %s856_s19 = scalar_lea.vmem %s244_s15, 512  ;;  %p864_p5 = scmp.lt.s32.totalorder %s244_s15, %s244_s15 }
  0x16   : > { %p1122_p11 = pnand %p766_p9, %p1093_p1  ;;  %p857_p13 = scmp.ne.s32.totalorder %s244_s15, %s856_s19 }
  0x17   : > { %p865_p7 = scmp.lt.s32.totalorder %s856_s19, %s856_s19 }
  0x18   : > { %p847_p12 = pneg %p1122_p11 }
  0x19   : > { %p866_p10 = por %p865_p7, %p864_p5 }
  0x1a   : > { %p859_p0 = pnand %p857_p13, %p847_p12 }
  0x1c   : > { %p860_p3 = pneg %p859_p0 }
  0x1e   : > { %p867_p9 = pnand %p866_p10, %p860_p3 }
  0x20   : > { %870 = shalt.err (!%p867_p9)
}
  0x21   : > { %s1013_s20 = smov 128   ;;  %s1014_s21 = smov 8  }
  0x22   : > { %s1280_s1 = sld [smem:[#allocation14_spill]]  ;;  %s882_s30 = scalar_lea.vmem %s268_s18, 512 }
  0x23   : > { %p883_p6 = scmp.ne.s32.totalorder %s268_s18, %s882_s30  ;;  %p890_p1 = scmp.lt.s32.totalorder %s268_s18, %s268_s18 }
  0x24   : > { %p891_p4 = scmp.lt.s32.totalorder %s882_s30, %s882_s30 }
  0x25   : > { %p885_p13 = pnand %p883_p6, %p847_p12 }
  0x26   : > { %p892_p5 = por %p891_p4, %p890_p1 }
  0x27   : > { %p886_p0 = pneg %p885_p13 }
  0x28   : > { %769 = dma.hbm_to_vmem [thread:$0]  (!%p1122_p11), %s1280_s1, 512, %s244_s15, [#allocation7], %s1013_s20, %s1013_s20, %s1014_s21  }
  0x29   : > { %p893_p10 = pnand %p892_p5, %p886_p0 }
  0x2b   : > { %896 = shalt.err (!%p893_p10)
}
  0x2c   : > { %s1281_s5 = sld [smem:[#allocation15_spill]]  ;;  %s36_s15 = sadd.s32 1, %s1005_s28 }
  0x2d   : > { %s43_s17 = sadd.s32 1, %s997_s26  ;;  %p38_p1 = scmp.ge.s32.totalorder %s36_s15, 2 }
  0x2e   : > { %p50_p4 = scmp.ne.s32.totalorder %s997_s26, %s993_s25  ;;  %p51_p6 = scmp.eq.s32.totalorder %s1009_s29, 0 }
  0x2f   : > { %p783_p12 = scmp.lt.s32.totalorder %s1009_s29, 2  ;;  %s1296_s15 = smov (%p38_p1, %s36_s15), 0 }
  0x30   : > { %1282 = sst [smem:[#allocation13_spill]] %s1296_s15  ;;  %p52_p3 = por %p51_p6, %p50_p4 }
  0x31   : > { %p1154_p7 = por %p1097_p2, %p50_p4  ;;  %s40_s19 = ssub.s32 %s1005_s28, %s1296_s15 }
  0x32   : > { %772 = dma.hbm_to_vmem [thread:$0]  (!%p1122_p11), %s1281_s5, 512, %s268_s18, [#allocation7], %s1013_s20, %s1013_s20, %s1014_s21  }
  0x33   : > { %s287_s22 = sand.u32 1, %s997_s26   ;;  %p41_p9 = scmp.eq.s32.totalorder %s40_s19, 0 }
  0x34   : > { %s705_s18 = sshll.u32 %s287_s22, 3  ;;  %s706_s20 = sshll.u32 %s1005_s28, 7 }
  0x35   : > { %s1163_s21 = scalar_select %p41_p9, %s997_s26, %s43_s17  }
  0x36   : > { %s296_s8 = scalar_lea.hbm %s1260_s0, %s706_s20  ;;  %s291_s14 = scalar_lea.vmem [#allocation3], %s705_s18 }
  0x37   : > { %s298_s1 = sshll.u32 %s291_s14, 4  ;;  %p1170_p11 = pnand %p783_p12, %p52_p3  ;;  %s299_s1 = int_to_ptr.vmem [resolvable:$true] %s298_s1 }
  0x38   : > { %s288_s5 = scalar_lea.sflag [#allocation4], %s287_s22  ;;  %s910_s19 = scalar_lea.vmem %s299_s1, 128 }
  0x39   : > { %p899_p2 = pneg %p1170_p11  ;;  %p911_p13 = scmp.ne.s32.totalorder %s299_s1, %s910_s19 }
  0x3a   : > { %s1015_s17 = smov [#allocation3]  }
  0x3b   : > { %p913_p0 = pnand %p911_p13, %p899_p2  ;;  %s915_s15 = sshll.u32 %s1015_s17, 4  ;;  %s916_s15 = int_to_ptr.vmem [resolvable:$false] %s915_s15 }
  0x3c   : > { %s917_s20 = scalar_lea.vmem %s916_s15, 256  ;;  %p918_p10 = scmp.lt.s32.totalorder %s299_s1, %s916_s15 }
  0x3d   : > { %p914_p5 = pneg %p913_p0  ;;  %p919_p1 = scmp.lt.s32.totalorder %s917_s20, %s910_s19 }
  0x3f   : > { %p920_p4 = por %p919_p1, %p918_p10 }
  0x41   : > { %p921_p6 = pnand %p920_p4, %p914_p5 }
  0x43   : > { %924 = shalt.err (!%p921_p6)
}
  0x44   : > { %776 = dma.hbm_to_vmem [thread:$0]  (!%p1170_p11), %s296_s8, 128, %s299_s1, %s288_s5  }
  0x45   : > { %307 = sbr.rel (%p1113_p8) target bundleno = 827 (0x33b), region = 48  ;;  %s1181_s22 = sand.u32 (!%p1113_p8), 1, %s993_s25  }
  0x46   : > { %s708_s18 = sshll.u32 (!%p1113_p8), %s1181_s22, 3  ;;  %s310_s23 = scalar_lea.sflag (!%p1113_p8), [#allocation4], %s1181_s22 }
  0x47   : > { %s313_s15 = scalar_lea.vmem (!%p1113_p8), [#allocation3], %s708_s18  ;;  %p1285_p12 = scmp.ne.s32.totalorder (!%p1113_p8), %s1276_s11, 0 }
  0x4a   : > { %976 = dma.done.wait (%p1285_p12), %s310_s23, 128  }
  0x4b   : > { %978 = vsyncadd (%p1285_p12), %s310_s23, 4294967168  ;;  %p1286_p3 = scmp.ne.s32.totalorder %s1274_s9, 0 }
  0x4d   : > { %980 = dma.done.wait (%p1286_p3), [#allocation7], 1024  }
  0x4e   : > { %982 = vsyncadd (%p1286_p3), [#allocation7], 4294966272  ;;  %v1016_v0 = vmov 0.0   ;;  %vm1017_vm0 = vmmov 0   ;;  %v366_v1 = vld [vmem:[#allocation6 + $0x18] sm:$0xff]  ;;  %v365_v2 = vld [vmem:[#allocation6 + $0x10] sm:$0xff] }
  0x4f   : > { %732 = vmatprep.subr.mxu0 %v1016_v0  ;;  %740 = vmatprep.mubr.msk.f32.mxu0 %vm1017_vm0, %v1016_v0  ;;  %v364_v3 = vld [vmem:[#allocation6 + $0x8] sm:$0xff]  ;;  %v363_v4 = vld [vmem:[#allocation6] sm:$0xff]  ;;  %v362_v5 = vld [vmem:[%s313_s15] sm:$0xff]  ;;  %vm374_vm1 = vcmask 261120   ;;  %s719_s10 = sshll.u32 %s1001_s27, 7  ;;  %s354_s19 = scalar_lea.vmem [#allocation9], %s708_s18 }
  0x50   : > { %743 = vmatprep.subr.mxu1 %v1016_v0  ;;  %751 = vmatprep.mubr.msk.f32.mxu1 %vm1017_vm0, %v1016_v0  ;;  %v712_v6 = vld [vmem:[%s1262_s2] ss:$0 sm:$0xff]  ;;  %v488_v21 = vld [vmem:[#allocation8 + $0x18] sm:$0xff]  ;;  %v487_v22 = vld [vmem:[#allocation8 + $0x10] sm:$0xff]  ;;  %s586_s17 = sshll.u32 %s354_s19, 4  ;;  %s1218_s15 = scalar_lea.hbm %s1267_s7, %s719_s10  ;;  %s587_s17 = int_to_ptr.vmem [resolvable:$true] %s586_s17 }
  0x51   : > { %733 = vmatpush3.msra.mxu0 %v366_v1  ;;  %744 = vmatpush3.msra.mxu1 %v488_v21  ;;  %v486_v23 = vld [vmem:[#allocation8 + $0x8] sm:$0xff]  ;;  %v485_v24 = vld [vmem:[#allocation8] sm:$0xff]  ;;  %s572_s1 = scalar_lea.sflag [#allocation5], %s1181_s22  ;;  %s925_s5 = scalar_lea.vmem %s587_s17, 128 }
  0x52   : > { %734 = vmatprep.subr.mxu0 %v1016_v0  ;;  %745 = vmatprep.subr.mxu1 %v1016_v0  ;;  %v714_v29 = vld [vmem:[%s1263_s3] ss:$0 sm:$0xff]  ;;  %p926_p8 = scmp.ne.s32.totalorder %s587_s17, %s925_s5  ;;  %s1018_s27 = smov [#allocation9]  }
  0x53   : > { %735 = vmatpush3.msra.mxu0 %v365_v2  ;;  %746 = vmatpush3.msra.mxu1 %v487_v22  ;;  %v715_v31 = vld [vmem:[%s1264_s4] ss:$0 sm:$0xff]  ;;  %s929_s9 = sshll.u32 %s1018_s27, 4  ;;  %s930_s9 = int_to_ptr.vmem [resolvable:$false] %s929_s9 }
  0x54   : > { %736 = vmatprep.subr.mxu0 %v1016_v0  ;;  %747 = vmatprep.subr.mxu1 %v1016_v0  ;;  %v716_v35 = vld [vmem:[%s1266_s6] ss:$0 sm:$0xff]  ;;  %p927_p9 = pnand %p926_p8, %p1154_p7  ;;  %s931_s18 = scalar_lea.vmem %s930_s9, 256 }
  0x55   : > { %737 = vmatpush3.msra.mxu0 %v364_v3  ;;  %748 = vmatpush3.msra.mxu1 %v486_v23  ;;  %p932_p2 = scmp.lt.s32.totalorder %s587_s17, %s930_s9  ;;  %p933_p13 = scmp.lt.s32.totalorder %s931_s18, %s925_s5 }
  0x56   : > { %738 = vmatprep.subr.mxu0 %v1016_v0  ;;  %749 = vmatprep.subr.mxu1 %v1016_v0  ;;  %p928_p11 = pneg %p927_p9 }
  0x57   : > { %739 = vmatpush3.msra.mxu0 %v363_v4  ;;  %750 = vmatpush3.msra.mxu1 %v485_v24  ;;  %p934_p0 = por %p933_p13, %p932_p2 }
  0x58   : > { %741 = vmatmul.mubr.msk.f32.vlgmr.msra.gmra.mxu0 %vm374_vm1, %v362_v5 }
  0x59   : > { %p935_p5 = pnand %p934_p0, %p928_p11 }
 0x118   : > { %v444_v7 = vpop.f32.mrf.mxu0 }
 0x119   : > { %v445_v8 = vadd.f32 %v712_v6, %v444_v7 }
 0x11a   : > { %v742_v9 = vpop.f32.mrf.mxu0 }
 0x11b   : > { %v449_v10 = vmul.f32 0.70710677, %v445_v8  ;;  %v448_v12 = vmul.f32 0.5, %v445_v8 }
 0x11d   : > { %841 = verf.f32 %v449_v10 }
 0x12a   : > { %v842_v11 = vpop.eup %841 }
 0x12b   : > { %v451_v13 = vadd.f32 1.0, %v842_v11 }
 0x12d   : > { %v452_v14 = vmul.f32 %v451_v13, %v448_v12 }
 0x12f   : > { %v453_v15 = vsel %vm374_vm1, %v452_v14, 0.0 }
 0x130   : > { %454 = vadd.xlane.f32.xlu0 %v453_v15 }
 0x1b9   : > { %v455_v16 = vpop.xlane.xlu0 %454 }
 0x1ba   : > { %v457_v17 = vmul.f32 0.03125, %v455_v16 }
 0x1bc   : > { %v458_v18 = vsub.f32 %v452_v14, %v457_v17 }
 0x1be   : > { %v459_v19 = vmul.f32 %v458_v18, %v458_v18 }
 0x1c0   : > { %v460_v20 = vsel %vm374_vm1, %v459_v19, 0.0 }
 0x1c1   : > { %461 = vadd.xlane.f32.xlu0 %v460_v20 }
 0x24a   : > { %v462_v25 = vpop.xlane.xlu0 %461 }
 0x24b   : > { %v463_v26 = vmul.f32 0.03125, %v462_v25 }
 0x24d   : > { %v464_v27 = vadd.f32 1e-12, %v463_v26 }
 0x24f   : > { %843 = vrsqrt.f32 %v464_v27 }
 0x25c   : > { %v844_v28 = vpop.eup %843 }
 0x25d   : > { %v466_v30 = vmul.f32 %v844_v28, %v458_v18 }
 0x25f   : > { %v474_v32 = vmul.f32 %v714_v29, %v466_v30 }
 0x261   : > { %v482_v33 = vadd.f32 %v715_v31, %v474_v32 }
 0x263   : > { %483 = vst.msk [vmem:[#allocation2] sm:$0xff] %vm374_vm1, %v482_v33 }
 0x26a   : > { %v484_v34 = vld [vmem:[#allocation2] sm:$0xff] }
 0x26b   : > { %752 = vmatmul.mubr.msk.f32.vlgmr.msra.gmra.mxu1 %vm374_vm1, %v484_v34 }
 0x32b   : > { %v566_v36 = vpop.f32.mrf.mxu1 }
 0x32c   : > { %v567_v37 = vadd.f32 %v716_v35, %v566_v36 }
 0x32d   : > { %v753_v38 = vpop.f32.mrf.mxu1 }
 0x32e   : > { %570 = vst [vmem:[%s354_s19] sm:$0xff] %v567_v37 }
 0x32f   : > { %938 = shalt.err (!%p935_p5)
}
 0x330   : > { %s939_s11 = scalar_lea.hbm %s1218_s15, 128  ;;  %s943_s30 = scalar_lea.hbm %s1267_s7, 256 }
 0x331   : > { %p940_p10 = scmp.ne.s32.totalorder %s1218_s15, %s939_s11  ;;  %p944_p6 = scmp.lt.s32.totalorder %s1218_s15, %s1267_s7 }
 0x332   : > { %p945_p12 = scmp.lt.s32.totalorder %s943_s30, %s939_s11 }
 0x333   : > { %p941_p1 = pnand %p940_p10, %p1154_p7 }
 0x334   : > { %p946_p3 = por %p945_p12, %p944_p6 }
 0x335   : > { %p942_p4 = pneg %p941_p1 }
 0x337   : > { %p947_p8 = pnand %p946_p3, %p942_p4 }
 0x339   : > { %950 = shalt.err (!%p947_p8)
}
 0x33a   : > { %764 = dma.vmem_to_hbm [thread:$0]  (%p1154_p7), %s587_s17, 128, %s1218_s15, %s572_s1  }
 0x33b PF: > { %s598_s10 = sand.u32 1, %s989_s24   ;;  %p1287_p9 = scmp.ne.s32.totalorder %s1277_s12, 0 }
 0x33c   : > { %p1288_p11 = scmp.ge.s32.totalorder %s1009_s29, 2  ;;  %s599_s19 = scalar_lea.sflag [#allocation5], %s598_s10 }
 0x33e   : > { %p778_p2 = pnand %p1288_p11, %p1287_p9 }
 0x340   : > { %p779_p13 = pneg %p778_p2 }
 0x342   : > { %984 = dma.done.wait (%p779_p13), %s599_s19, 128  }
 0x343   : > { %986 = vsyncadd (%p779_p13), %s599_s19, 4294967168  ;;  %s24_s29 = sadd.s32 1, %s1009_s29   ;;  %s1289_s16 = sld [smem:[#allocation13_spill]] }
 0x344   : > { %p21_p0 = scmp.ge.s32.totalorder %s24_s29, 4   ;;  %s1290_s24 = smov %s993_s25 }
 0x345   : > { %s1291_s25 = smov %s997_s26  ;;  %s1292_s26 = smov %s1163_s21 }
 0x346   : > { %s1293_s27 = smov %s1005_s28  ;;  %23 = sbr.rel (!%p21_p0) target bundleno = 10 (0xa), region = 109 }
 0x349   : > { %s1294_s28 = smov %s1289_s16 }
 0x34b   :  { %604 = vsyncpa [#allocation4], 1 }
 0x34c   :  { %606 = vsyncpa [#allocation4 + $0x1], 1 }
 0x34d   :  { %607 = vsyncpa [#allocation7], 1 }
 0x34e   :  { %608 = vsyncpa [#allocation5], 1 }
 0x34f   :  { %610 = vsyncpa [#allocation5 + $0x1], 1 }

</bundles_post_ra>
